<compile_context>
chip_gen: v7x
topology: tpu7x:2x2x1
jax: 0.10.0
libtpu: 0.0.40
codegen_flags: <defaults>
</compile_context>

<pallas_src>
import functools

import jax
import jax.numpy as jnp
from jax.experimental import pallas as pl
from jax.experimental.pallas import tpu as pltpu


def _round_up(n, m):
    return ((n + m - 1) // m) * m


def _mlp_kernel(x_ref, w1_ref, b1_ref, w2_ref, b2_ref, w3_ref, b3_ref, o_ref,
                *, compute_dtype, precision):
    # One transpose of the narrow-feature x tile: (TB, D_in) -> (D_in, TB).
    xT = x_ref[...].T.astype(compute_dtype)                       # (D_in, TB)

    # fc1 + ReLU: (128, D_in) @ (D_in, TB) -> (128, TB), f32 accumulation.
    h1 = jnp.dot(w1_ref[...], xT,
                 preferred_element_type=jnp.float32, precision=precision)
    h1 = jnp.maximum(h1 + b1_ref[...], 0.0)                       # (128, TB)

    # fc2 + ReLU: (64, 128) @ (128, TB) -> (64, TB).
    h2 = jnp.dot(w2_ref[...], h1.astype(compute_dtype),
                 preferred_element_type=jnp.float32, precision=precision)
    h2 = jnp.maximum(h2 + b2_ref[...], 0.0)                       # (64, TB)

    # fc3: VPU multiply by the (64, 1) weight column + cross-sublane reduce.
    # Result is already lane-major -> lane-dense (1, TILE_B) store, no
    # TILE_B-scaling XLU transpose.
    out = jnp.sum(h2 * w3_ref[...], axis=0, keepdims=True) + b3_ref[...]
    o_ref[...] = out.astype(o_ref.dtype)                          # (1, TB)


def interatomic_potential_nn(x, params, *, tile_b=4096,
                             compute_dtype=jnp.bfloat16):
    """x: (B, input_dim) -> (B, 1) float32.

    params use PyTorch nn.Linear layout: w1 (128, D_in), b1 (128,),
    w2 (64, 128), b2 (64,), w3 (1, 64), b3 (1,).
    """
    w1, b1 = params["w1"], params["b1"]
    w2, b2 = params["w2"], params["b2"]
    w3, b3 = params["w3"], params["b3"]
    B, d_in = x.shape
    compute_dtype = jnp.dtype(compute_dtype)

    # Pre-cast MXU weights once in the wrapper (VMEM-resident afterwards).
    w1c = w1.astype(compute_dtype)                         # (128, D_in)
    w2c = w2.astype(compute_dtype)                         # (64, 128)
    w3c = w3.reshape(64, 1).astype(jnp.float32)            # fc3 column (VPU)
    b1c = b1.reshape(128, 1).astype(jnp.float32)
    b2c = b2.reshape(64, 1).astype(jnp.float32)
    b3c = b3.reshape(1, 1).astype(jnp.float32)

    # f32 path: explicit HIGHEST precision on the MXU (multi-pass bf16).
    precision = (jax.lax.Precision.HIGHEST
                 if compute_dtype == jnp.float32 else None)

    # Batch tile: multiple of 128 (lane-dense output); never bigger than the
    # padded batch; >= 2 grid steps when B allows it (v7x megacore).
    req = _round_up(max(int(tile_b), 128), 128)
    cap_full = _round_up(B, 128)
    tile_b = min(req, cap_full)
    if B > 128:
        tile_b = min(tile_b, max(_round_up(pl.cdiv(B, 2), 128), 128))
    tile_b = max(tile_b, 128)

    num_blocks = pl.cdiv(B, tile_b)
    padded_b = num_blocks * tile_b
    if padded_b != B:
        # Pallas does no runtime bounds checks on VMEM refs -> pad explicitly.
        x = jnp.pad(x, ((0, padded_b - B), (0, 0)))

    def const(a):  # same block every grid step -> DMA'd once, VMEM-resident
        return pl.BlockSpec(a.shape, lambda i, _nd=a.ndim: (0,) * _nd)

    flops = 2 * B * (d_in * 128 + 128 * 64 + 64)
    bytes_accessed = (B * d_in * x.dtype.itemsize + B * 4
                      + sum(int(a.size) * a.dtype.itemsize
                            for a in (w1c, b1c, w2c, b2c, w3c, b3c)))

    out2 = pl.pallas_call(
        functools.partial(_mlp_kernel, compute_dtype=compute_dtype,
                          precision=precision),
        grid=(num_blocks,),
        out_shape=jax.ShapeDtypeStruct((1, padded_b), jnp.float32),
        in_specs=[
            pl.BlockSpec((tile_b, d_in), lambda i: (i, 0)),   # x: streamed
            const(w1c), const(b1c), const(w2c), const(b2c),
            const(w3c), const(b3c),
        ],
        out_specs=pl.BlockSpec((1, tile_b), lambda i: (0, i)),
        compiler_params=pltpu.CompilerParams(
            dimension_semantics=("parallel",),
            vmem_limit_bytes=32 * 1024 * 1024),
        cost_estimate=pl.CostEstimate(flops=int(flops), transcendentals=0,
                                      bytes_accessed=int(bytes_accessed)),
    )(x, w1c, b1c, w2c, b2c, w3c, b3c)

    return out2[0, :B].reshape(B, 1)


def init_params(key, input_dim):
    """PyTorch nn.Linear-style init and layout: W (out, in), b (out,)."""
    params = {}
    for name, fan_in, fan_out in (("1", input_dim, 128), ("2", 128, 64),
                                  ("3", 64, 1)):
        key, kw, kb = jax.random.split(key, 3)
        bound = 1.0 / (fan_in ** 0.5)
        params[f"w{name}"] = jax.random.uniform(
            kw, (fan_out, fan_in), jnp.float32, -bound, bound)
        params[f"b{name}"] = jax.random.uniform(
            kb, (fan_out,), jnp.float32, -bound, bound)
    return params


def _reference(x, p):
    h1 = jnp.maximum(x @ p["w1"].T + p["b1"], 0.0)
    h2 = jnp.maximum(h1 @ p["w2"].T + p["b2"], 0.0)
    return h2 @ p["w3"].T + p["b3"]


if __name__ == "__main__":
    key = jax.random.PRNGKey(0)
    key, kx = jax.random.split(key)

    batch, input_dim = 300, 32          # deliberately not a multiple of 128
    x = jax.random.normal(kx, (batch, input_dim), jnp.float32)
    params = init_params(key, input_dim)
    ref = _reference(x, params)

    # Default path: bf16 MXU inputs, f32 accumulation, 2-block grid.
    out = jax.block_until_ready(interatomic_potential_nn(x, params))
    assert out.shape == (batch, 1), out.shape
    assert jnp.allclose(out, ref, atol=5e-2, rtol=5e-2), "bf16 mismatch vs reference"

    # f32 path (precision=HIGHEST), small tile -> 3 blocks + padded tail.
    out_f32 = jax.block_until_ready(
        interatomic_potential_nn(x, params, tile_b=128,
                                 compute_dtype=jnp.float32))
    assert out_f32.shape == (batch, 1)
    assert jnp.allclose(out_f32, ref, atol=1e-4, rtol=1e-4), "f32 mismatch vs reference"

    # Tiny batch (< one tile): clamped tile + padding path.
    x_small = x[:8]
    out_small = jax.block_until_ready(interatomic_potential_nn(x_small, params))
    assert out_small.shape == (8, 1)
    assert jnp.allclose(out_small, ref[:8], atol=5e-2, rtol=5e-2), "small-batch mismatch"

    print("KERNEL_OK")
</pallas_src>

<mosaic_0001>
module attributes {stable_mosaic.version = 11 : i64} {
  func.func @_mlp_kernel(%arg0: i32, %arg1: memref<256x32xf32, #tpu.memory_space<vmem>>, %arg2: memref<128x32xbf16, #tpu.memory_space<vmem>>, %arg3: memref<128x1xf32, #tpu.memory_space<vmem>>, %arg4: memref<64x128xbf16, #tpu.memory_space<vmem>>, %arg5: memref<64x1xf32, #tpu.memory_space<vmem>>, %arg6: memref<64x1xf32, #tpu.memory_space<vmem>>, %arg7: memref<1x1xf32, #tpu.memory_space<vmem>>, %arg8: memref<1x256xf32, #tpu.memory_space<vmem>>) attributes {dimension_semantics = [#tpu.dimension_semantics<parallel>], iteration_bounds = array<i64: 2>, scalar_prefetch = 0 : i64, scratch_operands = 0 : i64, tpu.core_type = #tpu.core_type<tc>, window_params = [{transform_indices = @transform_0, window_bounds = array<i64: 256, 32>}, {pipeline_mode = #tpu.pipeline_mode<synchronous>, transform_indices = @transform_1, window_bounds = array<i64: 128, 32>}, {pipeline_mode = #tpu.pipeline_mode<synchronous>, transform_indices = @transform_2, window_bounds = array<i64: 128, 1>}, {pipeline_mode = #tpu.pipeline_mode<synchronous>, transform_indices = @transform_3, window_bounds = array<i64: 64, 128>}, {pipeline_mode = #tpu.pipeline_mode<synchronous>, transform_indices = @transform_4, window_bounds = array<i64: 64, 1>}, {pipeline_mode = #tpu.pipeline_mode<synchronous>, transform_indices = @transform_5, window_bounds = array<i64: 64, 1>}, {pipeline_mode = #tpu.pipeline_mode<synchronous>, transform_indices = @transform_6, window_bounds = array<i64: 1, 1>}, {transform_indices = @transform_7, window_bounds = array<i64: 1, 256>}]} {
    %c0 = arith.constant 0 : index
    %c0_0 = arith.constant 0 : index
    %0 = vector.load %arg1[%c0, %c0_0] : memref<256x32xf32, #tpu.memory_space<vmem>>, vector<256x32xf32>
    %1 = tpu.transpose %0, [1, 0] : vector<256x32xf32> -> vector<32x256xf32>
    %2 = arith.truncf %1 : vector<32x256xf32> to vector<32x256xbf16>
    %c0_1 = arith.constant 0 : index
    %c0_2 = arith.constant 0 : index
    %3 = vector.load %arg2[%c0_1, %c0_2] : memref<128x32xbf16, #tpu.memory_space<vmem>>, vector<128x32xbf16>
    %cst = arith.constant dense<0.000000e+00> : vector<128x256xf32>
    %4 = tpu.matmul %3, %2, %cst {dimension_numbers = #tpu.dot_dimension_numbers<[1], [0], [0], [1], [0, 0, 1, 1], [], []>} : vector<128x32xbf16>, vector<32x256xbf16>, vector<128x256xf32> -> vector<128x256xf32>
    %c0_3 = arith.constant 0 : index
    %c0_4 = arith.constant 0 : index
    %5 = vector.load %arg3[%c0_3, %c0_4] : memref<128x1xf32, #tpu.memory_space<vmem>>, vector<128x1xf32>
    %6 = vector.broadcast %5 : vector<128x1xf32> to vector<128x256xf32>
    %7 = arith.addf %4, %6 : vector<128x256xf32>
    %cst_5 = arith.constant 0.000000e+00 : f32
    %8 = vector.broadcast %cst_5 : f32 to vector<128x256xf32>
    %9 = arith.maximumf %7, %8 : vector<128x256xf32>
    %c0_6 = arith.constant 0 : index
    %c0_7 = arith.constant 0 : index
    %10 = vector.load %arg4[%c0_6, %c0_7] : memref<64x128xbf16, #tpu.memory_space<vmem>>, vector<64x128xbf16>
    %11 = arith.truncf %9 : vector<128x256xf32> to vector<128x256xbf16>
    %cst_8 = arith.constant dense<0.000000e+00> : vector<64x256xf32>
    %12 = tpu.matmul %10, %11, %cst_8 {dimension_numbers = #tpu.dot_dimension_numbers<[1], [0], [0], [1], [0, 0, 1, 1], [], []>} : vector<64x128xbf16>, vector<128x256xbf16>, vector<64x256xf32> -> vector<64x256xf32>
    %c0_9 = arith.constant 0 : index
    %c0_10 = arith.constant 0 : index
    %13 = vector.load %arg5[%c0_9, %c0_10] : memref<64x1xf32, #tpu.memory_space<vmem>>, vector<64x1xf32>
    %14 = vector.broadcast %13 : vector<64x1xf32> to vector<64x256xf32>
    %15 = arith.addf %12, %14 : vector<64x256xf32>
    %cst_11 = arith.constant 0.000000e+00 : f32
    %16 = vector.broadcast %cst_11 : f32 to vector<64x256xf32>
    %17 = arith.maximumf %15, %16 : vector<64x256xf32>
    %c0_12 = arith.constant 0 : index
    %c0_13 = arith.constant 0 : index
    %18 = vector.load %arg6[%c0_12, %c0_13] : memref<64x1xf32, #tpu.memory_space<vmem>>, vector<64x1xf32>
    %19 = vector.broadcast %18 : vector<64x1xf32> to vector<64x256xf32>
    %20 = arith.mulf %17, %19 : vector<64x256xf32>
    %cst_14 = arith.constant dense<0.000000e+00> : vector<256xf32>
    %21 = vector.multi_reduction <add>, %20, %cst_14 [0] : vector<64x256xf32> to vector<256xf32>
    %22 = vector.shape_cast %21 : vector<256xf32> to vector<1x256xf32>
    %c0_15 = arith.constant 0 : index
    %c0_16 = arith.constant 0 : index
    %23 = vector.load %arg7[%c0_15, %c0_16] : memref<1x1xf32, #tpu.memory_space<vmem>>, vector<1x1xf32>
    %24 = vector.broadcast %23 : vector<1x1xf32> to vector<1x256xf32>
    %25 = arith.addf %22, %24 : vector<1x256xf32>
    %c0_17 = arith.constant 0 : index
    %c0_18 = arith.constant 0 : index
    %26 = vector.load %arg8[%c0_17, %c0_18] : memref<1x256xf32, #tpu.memory_space<vmem>>, vector<1x256xf32>
    tpu.vector_store %arg8[%c0_17, %c0_18], %25 {strides = array<i32>} : memref<1x256xf32, #tpu.memory_space<vmem>>, vector<1x256xf32>,
    return
  }
  func.func @transform_0(%arg0: i32) -> (i32, i32) {
    %c0_i32 = arith.constant 0 : i32
    %c0_i32_0 = arith.constant 0 : i32
    return %arg0, %c0_i32 : i32, i32
  }
  func.func @transform_1(%arg0: i32) -> (i32, i32) {
    %c0_i32 = arith.constant 0 : i32
    %c0_i32_0 = arith.constant 0 : i32
    %c0_i32_1 = arith.constant 0 : i32
    return %c0_i32, %c0_i32_0 : i32, i32
  }
  func.func @transform_2(%arg0: i32) -> (i32, i32) {
    %c0_i32 = arith.constant 0 : i32
    %c0_i32_0 = arith.constant 0 : i32
    %c0_i32_1 = arith.constant 0 : i32
    return %c0_i32, %c0_i32_0 : i32, i32
  }
  func.func @transform_3(%arg0: i32) -> (i32, i32) {
    %c0_i32 = arith.constant 0 : i32
    %c0_i32_0 = arith.constant 0 : i32
    %c0_i32_1 = arith.constant 0 : i32
    return %c0_i32, %c0_i32_0 : i32, i32
  }
  func.func @transform_4(%arg0: i32) -> (i32, i32) {
    %c0_i32 = arith.constant 0 : i32
    %c0_i32_0 = arith.constant 0 : i32
    %c0_i32_1 = arith.constant 0 : i32
    return %c0_i32, %c0_i32_0 : i32, i32
  }
  func.func @transform_5(%arg0: i32) -> (i32, i32) {
    %c0_i32 = arith.constant 0 : i32
    %c0_i32_0 = arith.constant 0 : i32
    %c0_i32_1 = arith.constant 0 : i32
    return %c0_i32, %c0_i32_0 : i32, i32
  }
  func.func @transform_6(%arg0: i32) -> (i32, i32) {
    %c0_i32 = arith.constant 0 : i32
    %c0_i32_0 = arith.constant 0 : i32
    %c0_i32_1 = arith.constant 0 : i32
    return %c0_i32, %c0_i32_0 : i32, i32
  }
  func.func @transform_7(%arg0: i32) -> (i32, i32) {
    %c0_i32 = arith.constant 0 : i32
    %c0_i32_0 = arith.constant 0 : i32
    return %c0_i32, %arg0 : i32, i32
  }
}

</mosaic_0001>

<bundles_post_ra>
// kernel: tpu_custom_call.1
= control target key start
LH: loop header
LB: loop body
LE: loop exit
PB: predicated region body
PF: predicated region fallthrough
CT: control target
= control target key end

     0   :  { %s1626_s0 = inlined_call_operand.vmem [shape: f32[512,32], index: 0, kind: input, shape index: {}]   ;;  %s1627_s1 = inlined_call_operand.vmem [shape: bf16[128,32], index: 1, kind: input, shape index: {}]   ;;  %s1628_s2 = inlined_call_operand.vmem [shape: f32[128,1], index: 2, kind: input, shape index: {}]   ;;  %s1629_s3 = inlined_call_operand.vmem [shape: bf16[64,128], index: 3, kind: input, shape index: {}]   ;;  %s1630_s4 = inlined_call_operand.vmem [shape: f32[64,1], index: 4, kind: input, shape index: {}]   ;;  %s1631_s5 = inlined_call_operand.vmem [shape: f32[64,1], index: 5, kind: input, shape index: {}]   ;;  %s1632_s6 = inlined_call_operand.<no memory space> [shape: f32[1,1], index: 6, kind: input, shape index: {}]   ;;  %s1633_s7 = inlined_call_operand.hbm [shape: f32[1,512], index: 7, kind: output, shape index: {}]  }
   0x1   :  { %v12_v0 = vstv %s1632_s6 }
   0x2   :  { %13 = vst [vmem:[#allocation2] sm:$0x1] %v12_v0 }
   0x3   :  { %14 = vsyncpa [#allocation4], 0 }
   0x4   :  { %16 = vsyncpa [#allocation4 + $0x1], 0  ;;  %s1339_s26 = smov 0   ;;  %s1341_s27 = smov 0  }
   0x5   :  { %s1343_s28 = smov 0   ;;  %s1345_s29 = smov 0  }
   0x6 LB: > { %s1088_s6 = sadd.s32 4294967295, %s1291_s29   ;;  %s1089_s30 = sadd.s32 4294967294, %s1291_s29   ;;  %s1291_s29 = sphi %s1345_s29, %s1639_s29   ;;  %s1287_s28 = sphi %s1343_s28, %s1638_s28   ;;  %s1283_s27 = sphi %s1341_s27, %s1637_s27   ;;  %s1279_s26 = sphi %s1339_s26, %s1636_s26  }
   0x7   : > { %s1362_s8 = sadd.s32 1, %s1291_s29   ;;  %s181_s9 = sadd.s32 1, %s1287_s28 }
   0x8   : > { %s178_s10 = ssub.s32 %s1291_s29, %s1362_s8  ;;  %p191_p0 = scmp.ne.s32.totalorder %s1287_s28, %s1283_s27 }
   0x9   : > { %p179_p1 = scmp.eq.s32.totalorder %s178_s10, 0  ;;  %p192_p2 = scmp.eq.s32.totalorder %s1088_s6, 1 }
   0xa   : > { %p197_p3 = scmp.ne.s32.totalorder %s1283_s27, %s1279_s26  ;;  %p198_p4 = scmp.eq.s32.totalorder %s1089_s30, 1 }
   0xb   : > { %s1372_s11 = scalar_select %p179_p1, %s1287_s28, %s181_s9  }
   0xc   : > { %p1374_p5 = por %p192_p2, %p191_p0  ;;  %p1378_p6 = por %p198_p4, %p197_p3 }
   0xd   : > { %p1092_p7 = scmp.ge.s32.totalorder %s1291_s29, 1  ;;  %p243_p8 = scmp.lt.s32.totalorder %s1291_s29, 3 }
   0xf   : > { %p244_p9 = pnand %p1092_p7, %p243_p8 }
  0x10   : > { %s1384_s14 = sshll.u32 (!%p244_p9), %s1088_s6, 5  ;;  %v399_v1 = vld [vmem:[%s1628_s2] sm:$0xff] (!%p244_p9)  ;;  %v1293_v2 = vmov (!%p244_p9), 0   ;;  %v400_v3 = vld [vmem:[%s1628_s2 + $0x8] sm:$0xff] (!%p244_p9)  ;;  %v401_v4 = vld [vmem:[%s1628_s2 + $0x10] sm:$0xff] (!%p244_p9)  ;;  %vm535_vm0 = vcmask (!%p244_p9), 261120  }
  0x11   : > { %247 = sbr.rel (%p244_p9) target bundleno = 743 (0x2e7), region = 48  ;;  %p276_p10 = scmp.lt.s32.totalorder (!%p244_p9), %s1384_s14, 63  ;;  %1215 = vset.pattern.permute.xlu1 (!%p244_p9), %v1293_v2  ;;  %592 = vmatprep.mubr.bf16.mxu0 (!%p244_p9), %v1293_v2  ;;  %v402_v18 = vld [vmem:[%s1628_s2 + $0x18] sm:$0xff] (!%p244_p9)  ;;  %v403_v20 = vld [vmem:[%s1628_s2 + $0x20] sm:$0xff] (!%p244_p9)  ;;  %v404_v24 = vld [vmem:[%s1628_s2 + $0x28] sm:$0xff] (!%p244_p9) }
  0x12   : > { %417 = vperm.xlu1 (!%p244_p9), %1215, %v399_v1   ;;  %833 = vmatprep.mubr.bf16.mxu1 (!%p244_p9), %v1293_v2  ;;  %v405_v28 = vld [vmem:[%s1628_s2 + $0x30] sm:$0xff] (!%p244_p9)  ;;  %v406_v32 = vld [vmem:[%s1628_s2 + $0x38] sm:$0xff] (!%p244_p9)  ;;  %v407_v36 = vld [vmem:[%s1628_s2 + $0x40] sm:$0xff] (!%p244_p9)  ;;  %s272_s19 = sand.u32 (!%p244_p9), 1, %s1283_s27   ;;  %s1584_s6 = scalar_lea.hbm (!%p244_p9), %s1633_s7, %s1384_s14 }
  0x13   : > { %v408_v40 = vld [vmem:[%s1628_s2 + $0x48] sm:$0xff] (!%p244_p9)  ;;  %v409_v44 = vld [vmem:[%s1628_s2 + $0x50] sm:$0xff] (!%p244_p9)  ;;  %v410_v48 = vld [vmem:[%s1628_s2 + $0x58] sm:$0xff] (!%p244_p9)  ;;  %s1016_s30 = scalar_lea.sflag (!%p244_p9), [#allocation4], %s272_s19 }
  0x14   : > { %v411_v52 = vld [vmem:[%s1628_s2 + $0x60] sm:$0xff] (!%p244_p9)  ;;  %v412_v56 = vld [vmem:[%s1628_s2 + $0x68] sm:$0xff] (!%p244_p9)  ;;  %v413_v60 = vld [vmem:[%s1628_s2 + $0x70] sm:$0xff] (!%p244_p9) }
  0x15   : > { %v414_v0 = vld [vmem:[%s1628_s2 + $0x78] sm:$0xff] (!%p244_p9) }
  0x16   : > { %422 = vperm.xlu1 (!%p244_p9), %1215, %v400_v3   ;;  %v730_v3 = vld [vmem:[%s1630_s4 + $0x8] sm:$0xff] (!%p244_p9) }
  0x18   : > { %s277_s17 = scalar_select %p276_p10, %s1384_s14, 63 }
  0x1a   : > { %s1095_s20 = sshll.u32 %s277_s17, 3  ;;  %427 = vperm.xlu1 %1215, %v401_v4   ;;  %v731_v4 = vld [vmem:[%s1630_s4 + $0x10] sm:$0xff] }
  0x1b   : > { %s1403_s25 = scalar_lea.vmem %s1626_s0, %s1095_s20  ;;  %s1093_s20 = sshll.u32 %s272_s19, 1 }
  0x1c   : > { %v283_v5 = vld [vmem:[%s1403_s25] sm:$0xff]  ;;  %v284_v7 = vld [vmem:[%s1403_s25 + $0x8] sm:$0xff]  ;;  %v285_v11 = vld [vmem:[%s1403_s25 + $0x10] sm:$0xff]  ;;  %s274_s21 = scalar_lea.vmem [#allocation3], %s1093_s20 }
  0x1d   : > { %v299_v6 = vld [vmem:[%s1403_s25 + $0x80] sm:$0xff]  ;;  %v300_v9 = vld [vmem:[%s1403_s25 + $0x88] sm:$0xff]  ;;  %v301_v12 = vld [vmem:[%s1403_s25 + $0x90] sm:$0xff]  ;;  %s1030_s22 = sshll.u32 %s274_s21, 4  ;;  %s1586_s22 = int_to_ptr.vmem [resolvable:$true] %s1030_s22 }
  0x1e   : > { %v1163_v8 = vpack.i.bf16 %v283_v5, %v299_v6  ;;  %v1165_v10 = vpack.i.bf16 %v284_v7, %v300_v9  ;;  %v1167_v13 = vpack.i.bf16 %v285_v11, %v301_v12  ;;  %v286_v14 = vld [vmem:[%s1403_s25 + $0x18] sm:$0xff]  ;;  %v287_v16 = vld [vmem:[%s1403_s25 + $0x20] sm:$0xff]  ;;  %432 = vperm.xlu1 %1215, %v402_v18   ;;  %v288_v22 = vld [vmem:[%s1403_s25 + $0x28] sm:$0xff]  ;;  %s1229_s9 = scalar_lea.vmem %s1586_s22, 32 }
  0x1f   : > { %v302_v15 = vld [vmem:[%s1403_s25 + $0x98] sm:$0xff]  ;;  %v303_v17 = vld [vmem:[%s1403_s25 + $0xa0] sm:$0xff]  ;;  %v304_v23 = vld [vmem:[%s1403_s25 + $0xa8] sm:$0xff]  ;;  %p1230_p11 = scmp.ne.s32.totalorder %s1586_s22, %s1229_s9 }
  0x20   : > { %1164 = vxpose.xlu0.b32.start [1/16] (narrow) %v1163_v8, 32  ;;  %v1169_v19 = vpack.i.bf16 %v286_v14, %v302_v15  ;;  %v1171_v21 = vpack.i.bf16 %v287_v16, %v303_v17  ;;  %v1173_v25 = vpack.i.bf16 %v288_v22, %v304_v23  ;;  %v289_v26 = vld [vmem:[%s1403_s25 + $0x30] sm:$0xff]  ;;  %v290_v30 = vld [vmem:[%s1403_s25 + $0x38] sm:$0xff]  ;;  %v291_v34 = vld [vmem:[%s1403_s25 + $0x40] sm:$0xff] }
  0x21   : > { %v305_v27 = vld [vmem:[%s1403_s25 + $0xb0] sm:$0xff]  ;;  %v306_v31 = vld [vmem:[%s1403_s25 + $0xb8] sm:$0xff]  ;;  %v307_v35 = vld [vmem:[%s1403_s25 + $0xc0] sm:$0xff]  ;;  %p1231_p12 = pnand %p1230_p11, %p1374_p5 }
  0x22   : > { %437 = vperm.xlu1 %1215, %v403_v20   ;;  %v1175_v29 = vpack.i.bf16 %v289_v26, %v305_v27  ;;  %v1177_v33 = vpack.i.bf16 %v290_v30, %v306_v31  ;;  %v1179_v37 = vpack.i.bf16 %v291_v34, %v307_v35  ;;  %v292_v38 = vld [vmem:[%s1403_s25 + $0x48] sm:$0xff]  ;;  %v293_v42 = vld [vmem:[%s1403_s25 + $0x50] sm:$0xff]  ;;  %v294_v46 = vld [vmem:[%s1403_s25 + $0x58] sm:$0xff] }
  0x23   : > { %v308_v39 = vld [vmem:[%s1403_s25 + $0xc8] sm:$0xff]  ;;  %v309_v43 = vld [vmem:[%s1403_s25 + $0xd0] sm:$0xff]  ;;  %v310_v47 = vld [vmem:[%s1403_s25 + $0xd8] sm:$0xff]  ;;  %p1232_p13 = pneg %p1231_p12 }
  0x24   : > { %1166 = vxpose.xlu0.b32.cont [2/16] (narrow) %v1165_v10, 32  ;;  %v1181_v41 = vpack.i.bf16 %v292_v38, %v308_v39  ;;  %v1183_v45 = vpack.i.bf16 %v293_v42, %v309_v43  ;;  %v1185_v49 = vpack.i.bf16 %v294_v46, %v310_v47  ;;  %v295_v50 = vld [vmem:[%s1403_s25 + $0x60] sm:$0xff]  ;;  %v296_v54 = vld [vmem:[%s1403_s25 + $0x68] sm:$0xff]  ;;  %v297_v58 = vld [vmem:[%s1403_s25 + $0x70] sm:$0xff] }
  0x25   : > { %v311_v51 = vld [vmem:[%s1403_s25 + $0xe0] sm:$0xff]  ;;  %v312_v55 = vld [vmem:[%s1403_s25 + $0xe8] sm:$0xff]  ;;  %v313_v59 = vld [vmem:[%s1403_s25 + $0xf0] sm:$0xff] }
  0x26   : > { %442 = vperm.xlu1 %1215, %v404_v24   ;;  %v1187_v53 = vpack.i.bf16 %v295_v50, %v311_v51  ;;  %v1189_v57 = vpack.i.bf16 %v296_v54, %v312_v55  ;;  %v1191_v61 = vpack.i.bf16 %v297_v58, %v313_v59  ;;  %v298_v62 = vld [vmem:[%s1403_s25 + $0x78] sm:$0xff]  ;;  %v890_v6 = vld [vmem:[%s1631_s5] sm:$0xff]  ;;  %v891_v7 = vld [vmem:[%s1631_s5 + $0x8] sm:$0xff] }
  0x27   : > { %v314_v63 = vld [vmem:[%s1403_s25 + $0xf8] sm:$0xff]  ;;  %v733_v8 = vld [vmem:[%s1630_s4 + $0x20] sm:$0xff]  ;;  %v892_v9 = vld [vmem:[%s1631_s5 + $0x10] sm:$0xff]  ;;  %s1295_s25 = smov [#allocation3]  }
  0x28   : > { %1168 = vxpose.xlu0.b32.cont [3/16] (narrow) %v1167_v13, 32  ;;  %v1193_v1 = vpack.i.bf16 %v298_v62, %v314_v63  ;;  %v732_v5 = vld [vmem:[%s1630_s4 + $0x18] sm:$0xff]  ;;  %v734_v10 = vld [vmem:[%s1630_s4 + $0x28] sm:$0xff]  ;;  %v735_v12 = vld [vmem:[%s1630_s4 + $0x30] sm:$0xff]  ;;  %s1233_s10 = sshll.u32 %s1295_s25, 4  ;;  %s1234_s10 = int_to_ptr.vmem [resolvable:$false] %s1233_s10 }
  0x29   : > { %v893_v11 = vld [vmem:[%s1631_s5 + $0x18] sm:$0xff]  ;;  %v894_v13 = vld [vmem:[%s1631_s5 + $0x20] sm:$0xff]  ;;  %v895_v14 = vld [vmem:[%s1631_s5 + $0x28] sm:$0xff]  ;;  %s1235_s15 = scalar_lea.vmem %s1234_s10, 64  ;;  %p1236_p0 = scmp.lt.s32.totalorder %s1586_s22, %s1234_s10 }
  0x2a   : > { %447 = vperm.xlu1 %1215, %v405_v28   ;;  %v897_v15 = vld [vmem:[%s1631_s5 + $0x38] sm:$0xff]  ;;  %v1219_v34 = vld [vmem:[%s1627_s1 + $0x10] sm:$0xff]   ;;  %p1237_p1 = scmp.lt.s32.totalorder %s1235_s15, %s1229_s9 }
  0x2b   : > { %v1220_v35 = vld [vmem:[%s1627_s1 + $0x18] sm:$0xff]   ;;  %v1223_v38 = vld [vmem:[%s1627_s1 + $0x30] sm:$0xff]  }
  0x2c   : > { %1170 = vxpose.xlu0.b32.cont [4/16] (narrow) %v1169_v19, 32  ;;  %v1224_v39 = vld [vmem:[%s1627_s1 + $0x38] sm:$0xff]   ;;  %v896_v43 = vld [vmem:[%s1631_s5 + $0x30] sm:$0xff]  ;;  %p1238_p2 = por %p1237_p1, %p1236_p0 }
  0x2d   : > { %v736_v42 = vld [vmem:[%s1630_s4 + $0x38] sm:$0xff] }
  0x2e   : > { %452 = vperm.xlu1 %1215, %v406_v32   ;;  %v1217_v32 = vld [vmem:[%s1627_s1] sm:$0xff]   ;;  %p1239_p3 = pnand %p1238_p2, %p1232_p13 }
  0x30   : > { %1172 = vxpose.xlu0.b32.cont [5/16] (narrow) %v1171_v21, 32 }
  0x32   : > { %457 = vperm.xlu1 %1215, %v407_v36   ;;  %v1221_v36 = vld [vmem:[%s1627_s1 + $0x20] sm:$0xff]  }
  0x34   : > { %1174 = vxpose.xlu0.b32.cont [6/16] (narrow) %v1173_v25, 32 }
  0x36   : > { %462 = vperm.xlu1 %1215, %v408_v40   ;;  %v729_v40 = vld [vmem:[%s1630_s4] sm:$0xff] }
  0x38   : > { %1176 = vxpose.xlu0.b32.cont [7/16] (narrow) %v1175_v29, 32 }
  0x3a   : > { %467 = vperm.xlu1 %1215, %v409_v44  }
  0x3c   : > { %1178 = vxpose.xlu0.b32.cont [8/16] (narrow) %v1177_v33, 32  ;;  %v1218_v33 = vld [vmem:[%s1627_s1 + $0x8] sm:$0xff]  }
  0x3e   : > { %472 = vperm.xlu1 %1215, %v410_v48  }
  0x40   : > { %1180 = vxpose.xlu0.b32.cont [9/16] (narrow) %v1179_v37, 32  ;;  %v1222_v37 = vld [vmem:[%s1627_s1 + $0x28] sm:$0xff]  }
  0x42   : > { %477 = vperm.xlu1 %1215, %v411_v52  }
  0x44   : > { %1182 = vxpose.xlu0.b32.cont [10/16] (narrow) %v1181_v41, 32 }
  0x46   : > { %482 = vperm.xlu1 %1215, %v412_v56  }
  0x48   : > { %1184 = vxpose.xlu0.b32.cont [11/16] (narrow) %v1183_v45, 32  ;;  %v980_v45 = vld [vmem:[#allocation2] sm:$0x1] }
  0x4a   : > { %487 = vperm.xlu1 %1215, %v413_v60  }
  0x4c   : > { %1186 = vxpose.xlu0.b32.cont [12/16] (narrow) %v1185_v49, 32 }
  0x4e   : > { %492 = vperm.xlu1 %1215, %v414_v0  }
  0x50   : > { %1188 = vxpose.xlu0.b32.cont [13/16] (narrow) %v1187_v53, 32 }
  0x52   : > { %744 = vperm.xlu1 %1215, %v730_v3  }
  0x54   : > { %1190 = vxpose.xlu0.b32.cont [14/16] (narrow) %v1189_v57, 32 }
  0x56   : > { %749 = vperm.xlu1 %1215, %v731_v4  }
  0x58   : > { %1192 = vxpose.xlu0.b32.cont [15/16] (narrow) %v1191_v61, 32 }
  0x5a   : > { %754 = vperm.xlu1 %1215, %v732_v5  }
  0x5c   : > { %1194 = vxpose.xlu0.b32.end [16/16] (narrow) %v1193_v1, 32 }
  0x5e   : > { %900 = vperm.xlu1 %1215, %v890_v6  }
  0x62   : > { %905 = vperm.xlu1 %1215, %v891_v7  }
  0x66   : > { %759 = vperm.xlu1 %1215, %v733_v8  }
  0x6a   : > { %910 = vperm.xlu1 %1215, %v892_v9  }
  0x6e   : > { %764 = vperm.xlu1 %1215, %v734_v10  }
  0x72   : > { %915 = vperm.xlu1 %1215, %v893_v11  }
  0x76   : > { %769 = vperm.xlu1 %1215, %v735_v12  }
  0x7a   : > { %920 = vperm.xlu1 %1215, %v894_v13  }
  0x7e   : > { %925 = vperm.xlu1 %1215, %v895_v14  }
  0x82   : > { %935 = vperm.xlu1 %1215, %v897_v15  }
  0x85   : > { %1216 = vset.pattern.permute.xlu0 %v1293_v2 }
  0x86   : > { %739 = vperm.xlu0 %1216, %v729_v40  }
  0x8a   : > { %774 = vperm.xlu0 %1216, %v736_v42  }
  0x8e   : > { %930 = vperm.xlu0 %1216, %v896_v43  }
  0x91   : > { %v418_v41 = vpop.permute.xlu1 %417 }
  0x92   : > { %983 = vperm.xlu0 %1216, %v980_v45  }
  0x95   : > { %v423_v44 = vpop.permute.xlu1 %422 }
  0x99   : > { %v428_v46 = vpop.permute.xlu1 %427 }
  0x9d   : > { %v433_v47 = vpop.permute.xlu1 %432 }
  0xa0   : > { %v1195_v16 = vpop.trf.xlu0 }
  0xa1   : > { %v1196_v18 = vunpack.i.l.bf16 %v1195_v16  ;;  %v1199_v19 = vunpack.i.h.bf16 %v1195_v16  ;;  %v438_v48 = vpop.permute.xlu1 %437 }
  0xa4   : > { %v1200_v17 = vpop.trf.xlu0 }
  0xa5   : > { %v1201_v20 = vunpack.i.l.bf16 %v1200_v17  ;;  %v1204_v21 = vunpack.i.h.bf16 %v1200_v17  ;;  %v443_v49 = vpop.permute.xlu1 %442 }
  0xa7   : > { %v380_v22 = vpack.c.bf16 %v1201_v20, %v1196_v18  ;;  %v379_v23 = vpack.c.bf16 %v1204_v21, %v1199_v19 }
  0xa8   : > { %v1205_v24 = vpop.trf.xlu0 }
  0xa9   : > { %560 = vmatprep.subr.bf16.mxu0 %v380_v22  ;;  %v1209_v25 = vunpack.i.h.bf16 %v1205_v24  ;;  %v1206_v26 = vunpack.i.l.bf16 %v1205_v24  ;;  %v448_v57 = vpop.permute.xlu1 %447 }
  0xaa   : > { %561 = vmatpush1.bf16.msra.mxu0 %v379_v23 }
  0xac   : > { %v1210_v27 = vpop.trf.xlu0 }
  0xad   : > { %v1214_v28 = vunpack.i.h.bf16 %v1210_v27  ;;  %v1211_v29 = vunpack.i.l.bf16 %v1210_v27  ;;  %v453_v5 = vpop.permute.xlu1 %452 }
  0xaf   : > { %v382_v30 = vpack.c.bf16 %v1211_v29, %v1206_v26  ;;  %v381_v31 = vpack.c.bf16 %v1214_v28, %v1209_v25 }
  0xb1   : > { %562 = vmatprep.subr.bf16.mxu0 %v382_v30  ;;  %v458_v16 = vpop.permute.xlu1 %457 }
  0xb2   : > { %563 = vmatpush1.bf16.msra.mxu0 %v381_v31 }
  0xb5   : > { %1104 = vmatmul.mubr.msk.bf16.vlgmr.msra.gmra.mrb[0].mxu0 %vm535_vm0, %v1217_v32  ;;  %v463_v28 = vpop.permute.xlu1 %462 }
  0xb6   : > { %602 = vmatprep.mubr.bf16.mxu0 %v1293_v2 }
  0xb9   : > { %v468_v40 = vpop.permute.xlu1 %467 }
  0xbd   : > { %1105 = vmatmul.mubr.msk.bf16.gmra.mrb[4].mxu0 %vm535_vm0, %v1218_v33 }
  0xbe   : > { %612 = vmatprep.mubr.bf16.mxu0 %v1293_v2 }
  0xc5   : > { %1106 = vmatmul.mubr.msk.bf16.gmra.mrb[8].mxu0 %vm535_vm0, %v1219_v34 }
  0xc6   : > { %622 = vmatprep.mubr.bf16.mxu0 %v1293_v2 }
  0xcd   : > { %1107 = vmatmul.mubr.msk.bf16.gmra.mrb[12].mxu0 %vm535_vm0, %v1220_v35 }
  0xce   : > { %632 = vmatprep.mubr.bf16.mxu0 %v1293_v2 }
  0xd5   : > { %1108 = vmatmul.mubr.msk.bf16.gmra.mrb[16].mxu0 %vm535_vm0, %v1221_v36 }
  0xd6   : > { %642 = vmatprep.mubr.bf16.mxu0 %v1293_v2 }
  0xdd   : > { %1109 = vmatmul.mubr.msk.bf16.gmra.mrb[20].mxu0 %vm535_vm0, %v1222_v37 }
  0xde   : > { %652 = vmatprep.mubr.bf16.mxu0 %v1293_v2 }
  0xe5   : > { %1110 = vmatmul.mubr.msk.bf16.gmra.mrb[24].mxu0 %vm535_vm0, %v1223_v38 }
  0xe6   : > { %662 = vmatprep.mubr.bf16.mxu0 %v1293_v2 }
  0xed   : > { %1111 = vmatmul.mubr.msk.bf16.gmra.mrb[28].mxu0 %vm535_vm0, %v1224_v39 }
 0x188   : > { %v594_v50 = vpop.f32.mrb[0].mxu0 }
 0x189   : > { %v595_v51 = vadd.f32 %v594_v50, %v418_v41  ;;  %v596_v52 = vpop.f32.mrb[1].mxu0 }
 0x18a   : > { %v597_v53 = vadd.f32 %v596_v52, %v418_v41  ;;  %v598_v54 = vpop.f32.mrb[2].mxu0 }
 0x18b   : > { %v599_v55 = vadd.f32 %v598_v54, %v423_v44  ;;  %v600_v56 = vpop.f32.mrb[3].mxu0  ;;  %v673_v59 = vmax.f32 %v595_v51, 0.0  ;;  %v473_v51 = vpop.permute.xlu1 %472 }
 0x18c   : > { %v601_v58 = vadd.f32 %v600_v56, %v423_v44  ;;  %v674_v61 = vmax.f32 %v597_v53, 0.0 }
 0x18d   : > { %v675_v60 = vmax.f32 %v599_v55, 0.0 }
 0x18e   : > { %v676_v62 = vmax.f32 %v601_v58, 0.0 }
 0x18f   : > { %v713_v63 = vpack.c.bf16 %v675_v60, %v673_v59 }
 0x190   : > { %v604_v0 = vpop.f32.mrb[4].mxu0  ;;  %v714_v1 = vpack.c.bf16 %v676_v62, %v674_v61  ;;  %v478_v62 = vpop.permute.xlu1 %477 }
 0x191   : > { %v605_v3 = vadd.f32 %v604_v0, %v428_v46  ;;  %v606_v4 = vpop.f32.mrb[5].mxu0 }
 0x192   : > { %v607_v6 = vadd.f32 %v606_v4, %v428_v46  ;;  %v608_v7 = vpop.f32.mrb[6].mxu0  ;;  %801 = vmatprep.subr.bf16.mxu1 %v714_v1 }
 0x193   : > { %v609_v8 = vadd.f32 %v608_v7, %v433_v47  ;;  %v610_v9 = vpop.f32.mrb[7].mxu0  ;;  %802 = vmatpush1.bf16.msra.mxu1 %v713_v63  ;;  %v677_v11 = vmax.f32 %v605_v3, 0.0 }
 0x194   : > { %v611_v10 = vadd.f32 %v610_v9, %v433_v47  ;;  %v678_v13 = vmax.f32 %v607_v6, 0.0 }
 0x195   : > { %v679_v12 = vmax.f32 %v609_v8, 0.0 }
 0x196   : > { %v680_v14 = vmax.f32 %v611_v10, 0.0 }
 0x197   : > { %v715_v15 = vpack.c.bf16 %v679_v12, %v677_v11  ;;  %v483_v11 = vpop.permute.xlu1 %482 }
 0x198   : > { %v716_v17 = vpack.c.bf16 %v680_v14, %v678_v13  ;;  %v614_v18 = vpop.f32.mrb[8].mxu0 }
 0x199   : > { %v615_v19 = vadd.f32 %v614_v18, %v438_v48  ;;  %v616_v20 = vpop.f32.mrb[9].mxu0 }
 0x19a   : > { %v617_v21 = vadd.f32 %v616_v20, %v438_v48  ;;  %v618_v22 = vpop.f32.mrb[10].mxu0  ;;  %803 = vmatprep.subr.bf16.mxu1 %v716_v17 }
 0x19b   : > { %v619_v23 = vadd.f32 %v618_v22, %v443_v49  ;;  %v620_v24 = vpop.f32.mrb[11].mxu0  ;;  %804 = vmatpush1.bf16.msra.mxu1 %v715_v15  ;;  %v681_v26 = vmax.f32 %v615_v19, 0.0 }
 0x19c   : > { %v621_v25 = vadd.f32 %v620_v24, %v443_v49  ;;  %v682_v29 = vmax.f32 %v617_v21, 0.0 }
 0x19d   : > { %v683_v27 = vmax.f32 %v619_v23, 0.0  ;;  %v488_v23 = vpop.permute.xlu1 %487 }
 0x19e   : > { %v684_v30 = vmax.f32 %v621_v25, 0.0 }
 0x19f   : > { %v717_v31 = vpack.c.bf16 %v683_v27, %v681_v26 }
 0x1a0   : > { %v718_v32 = vpack.c.bf16 %v684_v30, %v682_v29  ;;  %v624_v33 = vpop.f32.mrb[12].mxu0 }
 0x1a1   : > { %v625_v34 = vadd.f32 %v624_v33, %v448_v57  ;;  %v626_v35 = vpop.f32.mrb[13].mxu0 }
 0x1a2   : > { %v627_v36 = vadd.f32 %v626_v35, %v448_v57  ;;  %v628_v37 = vpop.f32.mrb[14].mxu0  ;;  %805 = vmatprep.subr.bf16.mxu1 %v718_v32 }
 0x1a3   : > { %v629_v38 = vadd.f32 %v628_v37, %v453_v5  ;;  %v630_v39 = vpop.f32.mrb[15].mxu0  ;;  %806 = vmatpush1.bf16.msra.mxu1 %v717_v31  ;;  %v685_v42 = vmax.f32 %v625_v34, 0.0  ;;  %v493_v34 = vpop.permute.xlu1 %492 }
 0x1a4   : > { %v631_v41 = vadd.f32 %v630_v39, %v453_v5  ;;  %v686_v44 = vmax.f32 %v627_v36, 0.0 }
 0x1a5   : > { %v687_v43 = vmax.f32 %v629_v38, 0.0 }
 0x1a6   : > { %v688_v45 = vmax.f32 %v631_v41, 0.0 }
 0x1a7   : > { %v719_v46 = vpack.c.bf16 %v687_v43, %v685_v42 }
 0x1a8   : > { %v720_v47 = vpack.c.bf16 %v688_v45, %v686_v44  ;;  %v634_v48 = vpop.f32.mrb[16].mxu0 }
 0x1a9   : > { %v635_v49 = vadd.f32 %v634_v48, %v458_v16  ;;  %v636_v50 = vpop.f32.mrb[17].mxu0  ;;  %v1227_v48 = vld [vmem:[%s1629_s3 + $0x10] sm:$0xff]  }
 0x1aa   : > { %v637_v52 = vadd.f32 %v636_v50, %v458_v16  ;;  %v638_v53 = vpop.f32.mrb[18].mxu0  ;;  %807 = vmatprep.subr.bf16.mxu1 %v720_v47  ;;  %v1226_v47 = vld [vmem:[%s1629_s3 + $0x8] sm:$0xff]   ;;  %v745_v50 = vpop.permute.xlu1 %744 }
 0x1ab   : > { %v639_v54 = vadd.f32 %v638_v53, %v463_v28  ;;  %v640_v55 = vpop.f32.mrb[19].mxu0  ;;  %808 = vmatpush1.bf16.msra.mxu1 %v719_v46  ;;  %v689_v57 = vmax.f32 %v635_v49, 0.0  ;;  %v1225_v46 = vld [vmem:[%s1629_s3] sm:$0xff]   ;;  %v1228_v49 = vld [vmem:[%s1629_s3 + $0x18] sm:$0xff]  }
 0x1ac   : > { %v641_v56 = vadd.f32 %v640_v55, %v463_v28  ;;  %v690_v59 = vmax.f32 %v637_v52, 0.0 }
 0x1ad   : > { %v691_v58 = vmax.f32 %v639_v54, 0.0 }
 0x1ae   : > { %v692_v60 = vmax.f32 %v641_v56, 0.0 }
 0x1af   : > { %v721_v61 = vpack.c.bf16 %v691_v58, %v689_v57  ;;  %v740_v58 = vpop.permute.xlu0 %739 }
 0x1b0   : > { %v722_v63 = vpack.c.bf16 %v692_v60, %v690_v59  ;;  %v644_v0 = vpop.f32.mrb[20].mxu0 }
 0x1b1   : > { %v645_v1 = vadd.f32 %v644_v0, %v468_v40  ;;  %v646_v3 = vpop.f32.mrb[21].mxu0 }
 0x1b2   : > { %v647_v4 = vadd.f32 %v646_v3, %v468_v40  ;;  %v648_v5 = vpop.f32.mrb[22].mxu0  ;;  %809 = vmatprep.subr.bf16.mxu1 %v722_v63 }
 0x1b3   : > { %v649_v6 = vadd.f32 %v648_v5, %v473_v51  ;;  %v650_v7 = vpop.f32.mrb[23].mxu0  ;;  %810 = vmatpush1.bf16.msra.mxu1 %v721_v61  ;;  %v693_v9 = vmax.f32 %v645_v1, 0.0 }
 0x1b4   : > { %v651_v8 = vadd.f32 %v650_v7, %v473_v51  ;;  %v694_v12 = vmax.f32 %v647_v4, 0.0  ;;  %v750_v51 = vpop.permute.xlu1 %749 }
 0x1b5   : > { %v695_v10 = vmax.f32 %v649_v6, 0.0 }
 0x1b6   : > { %v696_v13 = vmax.f32 %v651_v8, 0.0 }
 0x1b7   : > { %v723_v14 = vpack.c.bf16 %v695_v10, %v693_v9 }
 0x1b8   : > { %v724_v15 = vpack.c.bf16 %v696_v13, %v694_v12  ;;  %v654_v16 = vpop.f32.mrb[24].mxu0  ;;  %v755_v52 = vpop.permute.xlu1 %754 }
 0x1b9   : > { %v655_v17 = vadd.f32 %v654_v16, %v478_v62  ;;  %v656_v18 = vpop.f32.mrb[25].mxu0 }
 0x1ba   : > { %v657_v19 = vadd.f32 %v656_v18, %v478_v62  ;;  %v658_v20 = vpop.f32.mrb[26].mxu0  ;;  %811 = vmatprep.subr.bf16.mxu1 %v724_v15 }
 0x1bb   : > { %v659_v21 = vadd.f32 %v658_v20, %v483_v11  ;;  %v660_v22 = vpop.f32.mrb[27].mxu0  ;;  %812 = vmatpush1.bf16.msra.mxu1 %v723_v14  ;;  %v697_v25 = vmax.f32 %v655_v17, 0.0 }
 0x1bc   : > { %v661_v24 = vadd.f32 %v660_v22, %v483_v11  ;;  %v698_v27 = vmax.f32 %v657_v19, 0.0  ;;  %v901_v53 = vpop.permute.xlu1 %900 }
 0x1bd   : > { %v699_v26 = vmax.f32 %v659_v21, 0.0 }
 0x1be   : > { %v700_v28 = vmax.f32 %v661_v24, 0.0 }
 0x1bf   : > { %v725_v29 = vpack.c.bf16 %v699_v26, %v697_v25 }
 0x1c0   : > { %v726_v30 = vpack.c.bf16 %v700_v28, %v698_v27  ;;  %v664_v31 = vpop.f32.mrb[28].mxu0  ;;  %v906_v54 = vpop.permute.xlu1 %905 }
 0x1c1   : > { %v665_v32 = vadd.f32 %v664_v31, %v488_v23  ;;  %v666_v33 = vpop.f32.mrb[29].mxu0 }
 0x1c2   : > { %v667_v35 = vadd.f32 %v666_v33, %v488_v23  ;;  %v668_v36 = vpop.f32.mrb[30].mxu0  ;;  %813 = vmatprep.subr.bf16.mxu1 %v726_v30 }
 0x1c3   : > { %v669_v37 = vadd.f32 %v668_v36, %v493_v34  ;;  %v670_v38 = vpop.f32.mrb[31].mxu0  ;;  %814 = vmatpush1.bf16.msra.mxu1 %v725_v29  ;;  %v701_v40 = vmax.f32 %v665_v32, 0.0 }
 0x1c4   : > { %v671_v39 = vadd.f32 %v670_v38, %v493_v34  ;;  %v702_v42 = vmax.f32 %v667_v35, 0.0  ;;  %v760_v55 = vpop.permute.xlu1 %759 }
 0x1c5   : > { %v703_v41 = vmax.f32 %v669_v37, 0.0 }
 0x1c6   : > { %v704_v43 = vmax.f32 %v671_v39, 0.0 }
 0x1c7   : > { %v727_v44 = vpack.c.bf16 %v703_v41, %v701_v40 }
 0x1c8   : > { %v728_v45 = vpack.c.bf16 %v704_v43, %v702_v42  ;;  %v911_v56 = vpop.permute.xlu1 %910 }
 0x1ca   : > { %815 = vmatprep.subr.bf16.mxu1 %v728_v45 }
 0x1cb   : > { %816 = vmatpush1.bf16.msra.mxu1 %v727_v44 }
 0x1cc   : > { %v765_v57 = vpop.permute.xlu1 %764 }
 0x1ce   : > { %834 = vmatmul.mubr.bf16.vlgmr.msra.gmra.mrb[0].mxu1 %v1225_v46 }
 0x1cf   : > { %843 = vmatprep.mubr.bf16.mxu1 %v1293_v2 }
 0x1d0   : > { %v916_v3 = vpop.permute.xlu1 %915 }
 0x1d4   : > { %v770_v16 = vpop.permute.xlu1 %769 }
 0x1d6   : > { %844 = vmatmul.mubr.bf16.gmra.mrb[4].mxu1 %v1226_v47 }
 0x1d7   : > { %853 = vmatprep.mubr.bf16.mxu1 %v1293_v2 }
 0x1d8   : > { %v921_v31 = vpop.permute.xlu1 %920 }
 0x1de   : > { %854 = vmatmul.mubr.bf16.gmra.mrb[8].mxu1 %v1227_v48  ;;  %v926_v48 = vpop.permute.xlu1 %925 }
 0x1df   : > { %863 = vmatprep.mubr.bf16.mxu1 %v1293_v2 }
 0x1e6   : > { %864 = vmatmul.mubr.bf16.gmra.mrb[12].mxu1 %v1228_v49  ;;  %v775_v49 = vpop.permute.xlu0 %774 }
 0x2a1   : > { %v835_v59 = vpop.f32.mrb[0].mxu1 }
 0x2a2   : > { %v836_v60 = vadd.f32 %v835_v59, %v740_v58  ;;  %v837_v61 = vpop.f32.mrb[1].mxu1 }
 0x2a3   : > { %v838_v62 = vadd.f32 %v837_v61, %v740_v58  ;;  %v839_v63 = vpop.f32.mrb[2].mxu1 }
 0x2a4   : > { %v874_v2 = vmax.f32 %v836_v60, 0.0  ;;  %v840_v0 = vadd.f32 %v839_v63, %v745_v50  ;;  %v841_v1 = vpop.f32.mrb[3].mxu1 }
 0x2a5   : > { %v875_v4 = vmax.f32 %v838_v62, 0.0  ;;  %v842_v5 = vadd.f32 %v841_v1, %v745_v50  ;;  %v931_v1 = vpop.permute.xlu0 %930 }
 0x2a6   : > { %v876_v6 = vmax.f32 %v840_v0, 0.0  ;;  %v938_v8 = vmul.f32 %v901_v53, %v874_v2 }
 0x2a7   : > { %v877_v7 = vmax.f32 %v842_v5, 0.0  ;;  %v939_v10 = vmul.f32 %v901_v53, %v875_v4 }
 0x2a8   : > { %v940_v9 = vmul.f32 %v906_v54, %v876_v6 }
 0x2a9   : > { %v941_v11 = vmul.f32 %v906_v54, %v877_v7  ;;  %v845_v12 = vpop.f32.mrb[4].mxu1  ;;  %v936_v7 = vpop.permute.xlu1 %935 }
 0x2aa   : > { %v954_v13 = vadd.f32 %v940_v9, %v938_v8  ;;  %v846_v14 = vadd.f32 %v845_v12, %v750_v51  ;;  %v847_v15 = vpop.f32.mrb[5].mxu1 }
 0x2ab   : > { %v967_v17 = vadd.f32 %v941_v11, %v939_v10  ;;  %v848_v18 = vadd.f32 %v847_v15, %v750_v51  ;;  %v849_v19 = vpop.f32.mrb[6].mxu1 }
 0x2ac   : > { %v878_v20 = vmax.f32 %v846_v14, 0.0  ;;  %v850_v21 = vadd.f32 %v849_v19, %v755_v52  ;;  %v851_v22 = vpop.f32.mrb[7].mxu1  ;;  %v986_v14 = vlaneseq }
 0x2ad   : > { %v879_v23 = vmax.f32 %v848_v18, 0.0  ;;  %v852_v24 = vadd.f32 %v851_v22, %v755_v52 }
 0x2ae   : > { %v942_v25 = vmul.f32 %v911_v56, %v878_v20  ;;  %v880_v26 = vmax.f32 %v850_v21, 0.0  ;;  %v987_v19 = vshrl.u32 %v986_v14, 7  ;;  %vm1012_vm1 = vcmp.lt.s32.totalorder %v986_v14, 256 }
 0x2af   : > { %v943_v27 = vmul.f32 %v911_v56, %v879_v23  ;;  %v881_v28 = vmax.f32 %v852_v24, 0.0  ;;  %v1294_v23 = vmov 1966171168  }
 0x2b0   : > { %v955_v29 = vadd.f32 %v954_v13, %v942_v25  ;;  %v944_v30 = vmul.f32 %v916_v3, %v880_v26  ;;  %v996_v24 = vunpack.c.l.s4 %v1294_v23  ;;  %v988_v26 = vsub.s32 0, %v987_v19 }
 0x2b1   : > { %v968_v32 = vadd.f32 %v967_v17, %v943_v27  ;;  %v945_v33 = vmul.f32 %v916_v3, %v881_v28  ;;  %v855_v34 = vpop.f32.mrb[8].mxu1  ;;  %v984_v28 = vpop.permute.xlu0 %983 }
 0x2b2   : > { %v956_v35 = vadd.f32 %v955_v29, %v944_v30  ;;  %v856_v36 = vadd.f32 %v855_v34, %v760_v55  ;;  %v857_v37 = vpop.f32.mrb[9].mxu1 }
 0x2b3   : > { %v969_v38 = vadd.f32 %v968_v32, %v945_v33  ;;  %v858_v39 = vadd.f32 %v857_v37, %v760_v55  ;;  %v859_v40 = vpop.f32.mrb[10].mxu1  ;;  %v989_v33 = vrot.slane %v984_v28, %v988_v26 }
 0x2b4   : > { %v882_v41 = vmax.f32 %v856_v36, 0.0  ;;  %v860_v42 = vadd.f32 %v859_v40, %v765_v57  ;;  %v861_v43 = vpop.f32.mrb[11].mxu1 }
 0x2b5   : > { %v883_v44 = vmax.f32 %v858_v39, 0.0  ;;  %v862_v45 = vadd.f32 %v861_v43, %v765_v57 }
 0x2b6   : > { %v946_v46 = vmul.f32 %v921_v31, %v882_v41  ;;  %v884_v47 = vmax.f32 %v860_v42, 0.0 }
 0x2b7   : > { %v947_v50 = vmul.f32 %v921_v31, %v883_v44  ;;  %v885_v51 = vmax.f32 %v862_v45, 0.0  ;;  %v997_v31 = vunpack.c.0.s8 %v996_v24 }
 0x2b8   : > { %v957_v52 = vadd.f32 %v956_v35, %v946_v46  ;;  %v948_v53 = vmul.f32 %v926_v48, %v884_v47 }
 0x2b9   : > { %v970_v54 = vadd.f32 %v969_v38, %v947_v50  ;;  %v949_v56 = vmul.f32 %v926_v48, %v885_v51  ;;  %v865_v58 = vpop.f32.mrb[12].mxu1  ;;  %v1000_v37 = vsub.s32 %v997_v31, %v987_v19 }
 0x2ba   : > { %v958_v59 = vadd.f32 %v957_v52, %v948_v53  ;;  %v866_v60 = vadd.f32 %v865_v58, %v770_v16  ;;  %v867_v55 = vpop.f32.mrb[13].mxu1 }
 0x2bb   : > { %v971_v61 = vadd.f32 %v970_v54, %v949_v56  ;;  %v868_v62 = vadd.f32 %v867_v55, %v770_v16  ;;  %v869_v63 = vpop.f32.mrb[14].mxu1 }
 0x2bc   : > { %v886_v2 = vmax.f32 %v866_v60, 0.0  ;;  %v870_v0 = vadd.f32 %v869_v63, %v775_v49  ;;  %v871_v57 = vpop.f32.mrb[15].mxu1 }
 0x2bd   : > { %v887_v3 = vmax.f32 %v868_v62, 0.0  ;;  %v872_v4 = vadd.f32 %v871_v57, %v775_v49 }
 0x2be   : > { %v950_v5 = vmul.f32 %v931_v1, %v886_v2  ;;  %v888_v6 = vmax.f32 %v870_v0, 0.0 }
 0x2bf   : > { %v951_v8 = vmul.f32 %v931_v1, %v887_v3  ;;  %v889_v9 = vmax.f32 %v872_v4, 0.0 }
 0x2c0   : > { %v959_v10 = vadd.f32 %v958_v59, %v950_v5  ;;  %v952_v11 = vmul.f32 %v936_v7, %v888_v6 }
 0x2c1   : > { %v972_v12 = vadd.f32 %v971_v61, %v951_v8  ;;  %v953_v13 = vmul.f32 %v936_v7, %v889_v9 }
 0x2c2   : > { %v960_v15 = vadd.f32 %v959_v10, %v952_v11 }
 0x2c3   : > { %v973_v16 = vadd.f32 %v972_v12, %v953_v13 }
 0x2c4   : > { %v961_v17 = vrot.slane %v960_v15, 4 }
 0x2c5   : > { %v974_v18 = vrot.slane %v973_v16, 4 }
 0x2c6   : > { %v962_v20 = vadd.f32 %v961_v17, %v960_v15 }
 0x2c7   : > { %v975_v21 = vadd.f32 %v974_v18, %v973_v16 }
 0x2c8   : > { %v963_v22 = vrot.slane %v962_v20, 2 }
 0x2c9   : > { %v976_v25 = vrot.slane %v975_v21, 2 }
 0x2ca   : > { %v964_v27 = vadd.f32 %v963_v22, %v962_v20 }
 0x2cb   : > { %v977_v29 = vadd.f32 %v976_v25, %v975_v21 }
 0x2cc   : > { %v965_v30 = vrot.slane %v964_v27, 1 }
 0x2cd   : > { %v978_v32 = vrot.slane %v977_v29, 1 }
 0x2ce   : > { %v966_v34 = vadd.f32 %v965_v30, %v964_v27 }
 0x2cf   : > { %v979_v35 = vadd.f32 %v978_v32, %v977_v29 }
 0x2d0   : > { %v990_v36 = vadd.f32 %v989_v33, %v966_v34 }
 0x2d1   : > { %v991_v38 = vadd.f32 %v989_v33, %v979_v35 }
 0x2d3   : > { %v994_v39 = vcombine.low %v990_v36, %v991_v38 }
 0x2d5   : > { %v1001_v40 = vrot.slane %v994_v39, %v1000_v37 }
 0x2d7   : > { %v1008_v41 = vrot.slane %v1001_v40, %v1000_v37 }
 0x2d9   : > { %1014 = vst.msk [vmem:[%s274_s21] sm:$0x3] %vm1012_vm1, %v1008_v41 }
 0x2da   : > { %1242 = shalt.err (!%p1239_p3)
}
 0x2db   : > { %s1243_s14 = scalar_lea.hbm %s1584_s6, 32  ;;  %s1247_s18 = scalar_lea.hbm %s1633_s7, 64 }
 0x2dc   : > { %p1244_p4 = scmp.ne.s32.totalorder %s1584_s6, %s1243_s14  ;;  %p1248_p9 = scmp.lt.u32.totalorder %s1584_s6, %s1633_s7 }
 0x2dd   : > { %p1249_p10 = scmp.lt.u32.totalorder %s1247_s18, %s1243_s14  ;;  %p1251_p12 = scmp.lt.u32.totalorder %s1243_s14, %s1584_s6 }
 0x2de   : > { %p1245_p7 = pnand %p1244_p4, %p1374_p5 }
 0x2df   : > { %p1250_p11 = por %p1249_p10, %p1248_p9 }
 0x2e0   : > { %p1246_p8 = pneg %p1245_p7 }
 0x2e1   : > { %p1252_p13 = por %p1251_p12, %p1250_p11 }
 0x2e3   : > { %p1253_p0 = pnand %p1252_p13, %p1246_p8 }
 0x2e5   : > { %1256 = shalt.err (!%p1253_p0)
}
 0x2e6   : > { %1122 = dma.vmem_to_hbm [thread:$0]  (%p1374_p5), %s1586_s22, 32, %s1584_s6, %s1016_s30  }
 0x2e7 PF: > { %p1128_p1 = scmp.ge.s32.totalorder %s1291_s29, 2  ;;  %s1042_s21 = sand.u32 1, %s1279_s26  }
 0x2e8   : > { %s1043_s23 = scalar_lea.sflag [#allocation4], %s1042_s21 }
 0x2e9   : > { %p1125_p2 = pnand %p1128_p1, %p1378_p6 }
 0x2eb   : > { %1274 = dma.done.wait (!%p1125_p2), %s1043_s23, 32  }
 0x2ec   : > { %1276 = vsyncadd (!%p1125_p2), %s1043_s23, 4294967264  ;;  %p19_p3 = scmp.ge.s32.totalorder %s1362_s8, 4   ;;  %s1636_s26 = smov %s1283_s27 }
 0x2ed   : > { %s1637_s27 = smov %s1287_s28  ;;  %s1638_s28 = smov %s1372_s11 }
 0x2ee   : > { %s1639_s29 = smov %s1362_s8  ;;  %21 = sbr.rel (!%p19_p3) target bundleno = 6 (0x6), region = 83 }
 0x2f5   :  { %1048 = vsyncpa [#allocation4], 1 }
 0x2f6   :  { %1050 = vsyncpa [#allocation4 + $0x1], 1 }

</bundles_post_ra>
